<compile_context>
chip_gen: v7x
topology: tpu7x:2x2x1
jax: 0.10.0
libtpu: 0.0.40
codegen_flags: <defaults>
</compile_context>

<pallas_src>
import jax
import jax.numpy as jnp
from jax.experimental import pallas as pl
from jax.experimental.pallas import tpu as pltpu


def _round_up(n: int, m: int) -> int:
    return -(-n // m) * m


def _num_tensorcores() -> int:
    """v7x has 2 TensorCores per chip; v5e/v6e have 1."""
    try:
        kind = jax.devices()[0].device_kind.lower()
    except Exception:
        return 1
    return 2 if "v7" in kind else 1


def _fnn_kernel(x_ref, w1_ref, w2_ref, w3_ref, o_ref):
    # Fused MLP: matmuls on the MXU with f32 accumulation, ReLU on the VPU.
    # x arrives in f32 and is cast to the weight dtype (bf16) in-kernel so every dot
    # stays on the full-rate MXU path; the cast rides in VPU slack.
    x = x_ref[...].astype(w1_ref.dtype)
    h = jnp.dot(x, w1_ref[...], preferred_element_type=jnp.float32)
    h = jnp.maximum(h, 0.0).astype(w2_ref.dtype)
    h = jnp.dot(h, w2_ref[...], preferred_element_type=jnp.float32)
    h = jnp.maximum(h, 0.0).astype(w3_ref.dtype)
    out = jnp.dot(h, w3_ref[...], preferred_element_type=jnp.float32)
    o_ref[...] = out.astype(o_ref.dtype)


def prepare_fnn_weights(weights, compute_dtype=jnp.bfloat16):
    """One-time weight prep (at parameter-load time, NOT per forward):
    PyTorch-style (out, in) Linear weights -> (in, out) in the compute dtype."""
    assert len(weights) == 3, "this fused kernel is specialized to 2 hidden layers"
    return tuple(jnp.asarray(w).T.astype(compute_dtype) for w in weights)


def fnn_forward(x, prepared_weights, *, bm=None):
    """x: (B, dim_in) f32; prepared_weights: output of prepare_fnn_weights."""
    w1, w2, w3 = prepared_weights
    B, dim_in = x.shape
    d1, d2, d_out = w1.shape[1], w2.shape[1], w3.shape[1]
    assert w1.shape[0] == dim_in and w2.shape[0] == d1 and w3.shape[0] == d2

    # Pad-aware batch tile: one grid step per TensorCore (v7x: 2, v5e/v6e: 1) so the
    # ~0.35us/step overhead is amortized and no TC idles; pad at most 7 rows.
    n_tc = _num_tensorcores()
    if bm is None:
        bm = min(_round_up(pl.cdiv(B, n_tc), 8), 1024)
    bm = max(8, min(bm, _round_up(B, 8)))
    B_pad = _round_up(B, bm)
    grid = (B_pad // bm,)

    x_in = x
    if B_pad != B:
        x_in = jnp.pad(x, ((0, B_pad - B), (0, 0)))

    w_isz = jnp.dtype(w1.dtype).itemsize
    x_isz = jnp.dtype(x.dtype).itemsize
    o_isz = jnp.dtype(x.dtype).itemsize

    # VMEM budget: every BlockSpec is double-buffered by default (weights included),
    # plus the bm x d1 / bm x d2 f32 intermediates live in VMEM during compute.
    # v7x has only 64 MiB physical VMEM (32 MiB scoped default): stay well under.
    vmem_bytes = (
        2 * (dim_in * d1 + d1 * d2 + d2 * d_out) * w_isz   # weights, x2 buffers
        + 2 * bm * dim_in * x_isz                          # x tile, x2 buffers
        + 2 * bm * d_out * o_isz                           # out tile, x2 buffers
        + 2 * bm * max(d1, d2) * 4                         # f32 intermediates
    )
    assert vmem_bytes < 24 * 1024 * 1024, "tile/weight combo too big for VMEM"

    cost = pl.CostEstimate(
        flops=2 * B_pad * (dim_in * d1 + d1 * d2 + d2 * d_out),
        transcendentals=0,
        bytes_accessed=(
            B_pad * dim_in * x_isz                                     # x
            + (dim_in * d1 + d1 * d2 + d2 * d_out) * w_isz             # weights
            + B_pad * d_out * o_isz                                    # output
        ),
    )

    out = pl.pallas_call(
        _fnn_kernel,
        out_shape=jax.ShapeDtypeStruct((B_pad, d_out), x.dtype),
        grid_spec=pl.GridSpec(
            grid=grid,
            in_specs=[
                pl.BlockSpec((bm, dim_in), lambda i: (i, 0)),   # x tile (f32)
                pl.BlockSpec((dim_in, d1), lambda i: (0, 0)),   # W1 (full, resident)
                pl.BlockSpec((d1, d2), lambda i: (0, 0)),       # W2
                pl.BlockSpec((d2, d_out), lambda i: (0, 0)),    # W3 (no lane padding)
            ],
            # Last block dim == full array dim (d_out), so this is legal even when
            # d_out < 128; a few masked stores beat a padded writeback.
            out_specs=pl.BlockSpec((bm, d_out), lambda i: (i, 0)),
        ),
        compiler_params=pltpu.CompilerParams(
            dimension_semantics=("parallel",),
        ),
        cost_estimate=cost,
    )(x_in, w1, w2, w3)

    if B_pad != B:
        out = out[:B]
    return out


def fnn_reference(x, weights):
    h = x
    for w in weights[:-1]:
        h = jnp.maximum(h @ jnp.asarray(w).T, 0.0)
    return h @ jnp.asarray(weights[-1]).T


if __name__ == "__main__":
    # Module config: FNN(hidden=(64, 64), dim_in=32, dim_out=16, bias=False)
    dim_in, hidden, dim_out = 32, (64, 64), 16
    batch = 256  # v7x: bm=128 -> grid=2 (both TCs); v5e/v6e: bm=256 -> grid=1

    key = jax.random.PRNGKey(0)
    kx, k1, k2, k3 = jax.random.split(key, 4)

    x = jax.random.normal(kx, (batch, dim_in), dtype=jnp.float32)

    # Deterministic "Kaiming-uniform-ish" init matching nn.Linear weight shapes (out, in).
    sizes = [dim_in, *hidden, dim_out]
    wkeys = [k1, k2, k3]
    weights = []
    for i, wk in enumerate(wkeys):
        fan_in = sizes[i]
        bound = 1.0 / (fan_in ** 0.5)
        w = jax.random.uniform(
            wk, (sizes[i + 1], sizes[i]), minval=-bound, maxval=bound, dtype=jnp.float32
        )
        weights.append(w)

    # Weight prep done ONCE (parameter-load time), not per forward call.
    prepared = prepare_fnn_weights(weights)

    out = fnn_forward(x, prepared)
    out = jax.block_until_ready(out)

    ref = fnn_reference(x, weights)
    assert out.shape == (batch, dim_out)
    assert out.dtype == x.dtype
    # bf16 operands with f32 accumulation: loosened tolerance vs the f32 reference.
    assert jnp.allclose(out, ref, atol=5e-2, rtol=5e-2), "mismatch vs pure-JAX reference"

    print("KERNEL_OK")
</pallas_src>

<mosaic_0001>
module attributes {stable_mosaic.version = 11 : i64} {
  func.func @_fnn_kernel(%arg0: i32, %arg1: memref<256x32xf32, #tpu.memory_space<vmem>>, %arg2: memref<32x64xbf16, #tpu.memory_space<vmem>>, %arg3: memref<64x64xbf16, #tpu.memory_space<vmem>>, %arg4: memref<64x16xbf16, #tpu.memory_space<vmem>>, %arg5: memref<256x16xf32, #tpu.memory_space<vmem>>) attributes {dimension_semantics = [#tpu.dimension_semantics<parallel>], iteration_bounds = array<i64: 1>, scalar_prefetch = 0 : i64, scratch_operands = 0 : i64, tpu.core_type = #tpu.core_type<tc>, window_params = [{transform_indices = @transform_0, window_bounds = array<i64: 256, 32>}, {pipeline_mode = #tpu.pipeline_mode<synchronous>, transform_indices = @transform_1, window_bounds = array<i64: 32, 64>}, {pipeline_mode = #tpu.pipeline_mode<synchronous>, transform_indices = @transform_2, window_bounds = array<i64: 64, 64>}, {pipeline_mode = #tpu.pipeline_mode<synchronous>, transform_indices = @transform_3, window_bounds = array<i64: 64, 16>}, {transform_indices = @transform_4, window_bounds = array<i64: 256, 16>}]} {
    %c0 = arith.constant 0 : index
    %c0_0 = arith.constant 0 : index
    %0 = vector.load %arg1[%c0, %c0_0] : memref<256x32xf32, #tpu.memory_space<vmem>>, vector<256x32xf32>
    %1 = arith.truncf %0 : vector<256x32xf32> to vector<256x32xbf16>
    %c0_1 = arith.constant 0 : index
    %c0_2 = arith.constant 0 : index
    %2 = vector.load %arg2[%c0_1, %c0_2] : memref<32x64xbf16, #tpu.memory_space<vmem>>, vector<32x64xbf16>
    %cst = arith.constant dense<0.000000e+00> : vector<256x64xf32>
    %3 = tpu.matmul %1, %2, %cst {dimension_numbers = #tpu.dot_dimension_numbers<[1], [0], [0], [1], [0, 0, 1, 1], [], []>} : vector<256x32xbf16>, vector<32x64xbf16>, vector<256x64xf32> -> vector<256x64xf32>
    %cst_3 = arith.constant 0.000000e+00 : f32
    %4 = vector.broadcast %cst_3 : f32 to vector<256x64xf32>
    %5 = arith.maximumf %3, %4 : vector<256x64xf32>
    %6 = arith.truncf %5 : vector<256x64xf32> to vector<256x64xbf16>
    %c0_4 = arith.constant 0 : index
    %c0_5 = arith.constant 0 : index
    %7 = vector.load %arg3[%c0_4, %c0_5] : memref<64x64xbf16, #tpu.memory_space<vmem>>, vector<64x64xbf16>
    %cst_6 = arith.constant dense<0.000000e+00> : vector<256x64xf32>
    %8 = tpu.matmul %6, %7, %cst_6 {dimension_numbers = #tpu.dot_dimension_numbers<[1], [0], [0], [1], [0, 0, 1, 1], [], []>} : vector<256x64xbf16>, vector<64x64xbf16>, vector<256x64xf32> -> vector<256x64xf32>
    %cst_7 = arith.constant 0.000000e+00 : f32
    %9 = vector.broadcast %cst_7 : f32 to vector<256x64xf32>
    %10 = arith.maximumf %8, %9 : vector<256x64xf32>
    %11 = arith.truncf %10 : vector<256x64xf32> to vector<256x64xbf16>
    %c0_8 = arith.constant 0 : index
    %c0_9 = arith.constant 0 : index
    %12 = vector.load %arg4[%c0_8, %c0_9] : memref<64x16xbf16, #tpu.memory_space<vmem>>, vector<64x16xbf16>
    %cst_10 = arith.constant dense<0.000000e+00> : vector<256x16xf32>
    %13 = tpu.matmul %11, %12, %cst_10 {dimension_numbers = #tpu.dot_dimension_numbers<[1], [0], [0], [1], [0, 0, 1, 1], [], []>} : vector<256x64xbf16>, vector<64x16xbf16>, vector<256x16xf32> -> vector<256x16xf32>
    %c0_11 = arith.constant 0 : index
    %c0_12 = arith.constant 0 : index
    %14 = vector.load %arg5[%c0_11, %c0_12] : memref<256x16xf32, #tpu.memory_space<vmem>>, vector<256x16xf32>
    tpu.vector_store %arg5[%c0_11, %c0_12], %13 {strides = array<i32>} : memref<256x16xf32, #tpu.memory_space<vmem>>, vector<256x16xf32>,
    return
  }
  func.func @transform_0(%arg0: i32) -> (i32, i32) {
    %c0_i32 = arith.constant 0 : i32
    %c0_i32_0 = arith.constant 0 : i32
    return %arg0, %c0_i32 : i32, i32
  }
  func.func @transform_1(%arg0: i32) -> (i32, i32) {
    %c0_i32 = arith.constant 0 : i32
    %c0_i32_0 = arith.constant 0 : i32
    %c0_i32_1 = arith.constant 0 : i32
    return %c0_i32, %c0_i32_0 : i32, i32
  }
  func.func @transform_2(%arg0: i32) -> (i32, i32) {
    %c0_i32 = arith.constant 0 : i32
    %c0_i32_0 = arith.constant 0 : i32
    %c0_i32_1 = arith.constant 0 : i32
    return %c0_i32, %c0_i32_0 : i32, i32
  }
  func.func @transform_3(%arg0: i32) -> (i32, i32) {
    %c0_i32 = arith.constant 0 : i32
    %c0_i32_0 = arith.constant 0 : i32
    %c0_i32_1 = arith.constant 0 : i32
    return %c0_i32, %c0_i32_0 : i32, i32
  }
  func.func @transform_4(%arg0: i32) -> (i32, i32) {
    %c0_i32 = arith.constant 0 : i32
    %c0_i32_0 = arith.constant 0 : i32
    return %arg0, %c0_i32 : i32, i32
  }
}

</mosaic_0001>

<bundles_post_ra>
// kernel: tpu_custom_call.1
= control target key start
LH: loop header
LB: loop body
LE: loop exit
PB: predicated region body
PF: predicated region fallthrough
CT: control target
= control target key end

     0   :  { %vm82_vm0 = vcmask 261120   ;;  %vm372_vm1 = vcmask 523264   ;;  %vm871_vm2 = vcmask 130048   ;;  %s1487_s1 = inlined_call_operand.vmem [shape: bf16[32,64], index: 1, kind: input, shape index: {}]   ;;  %s1488_s0 = inlined_call_operand.vmem [shape: f32[256,32], index: 0, kind: input, shape index: {}]   ;;  %s1489_s2 = inlined_call_operand.vmem [shape: bf16[64,64], index: 2, kind: input, shape index: {}]   ;;  %s1490_s3 = inlined_call_operand.vmem [shape: bf16[64,16], index: 3, kind: input, shape index: {}]   ;;  %s1491_s4 = inlined_call_operand.vmem [shape: f32[256,16], index: 4, kind: output, shape index: {}]  }
   0x1   :  { %v1144_v0 = vld [vmem:[%s1487_s1] sm:$0xff]   ;;  %v1145_v1 = vld [vmem:[%s1487_s1 + $0x8] sm:$0xff]   ;;  %v20_v5 = vld [vmem:[%s1488_s0 + $0x10] sm:$0xff] }
   0x2   :  { %1024 = vmatprep.subr.bf16.mxu0 %v1144_v0  ;;  %v18_v2 = vld [vmem:[%s1488_s0] sm:$0xff]  ;;  %v19_v3 = vld [vmem:[%s1488_s0 + $0x8] sm:$0xff]  ;;  %1140 = vmatprep.subr.bf16.mxu1 %v1144_v0  ;;  %v21_v6 = vld [vmem:[%s1488_s0 + $0x18] sm:$0xff] }
   0x3   :  { %1025 = vmatpush3.bf16.msra.mxu0 %v1144_v0  ;;  %v50_v4 = vpack.c.bf16 %v19_v3, %v18_v2  ;;  %1142 = vmatpush3.bf16.msra.mxu1 %v1144_v0  ;;  %v22_v7 = vld [vmem:[%s1488_s0 + $0x20] sm:$0xff]  ;;  %v23_v8 = vld [vmem:[%s1488_s0 + $0x28] sm:$0xff]  ;;  %v51_v9 = vpack.c.bf16 %v21_v6, %v20_v5  ;;  %v36_v14 = vld [vmem:[%s1488_s0 + $0x90] sm:$0xff] }
   0x4   :  { %1026 = vmatprep.subr.bf16.mxu0 %v1145_v1  ;;  %1141 = vmatprep.subr.bf16.mxu1 %v1145_v1  ;;  %v52_v10 = vpack.c.bf16 %v23_v8, %v22_v7  ;;  %v34_v11 = vld [vmem:[%s1488_s0 + $0x80] sm:$0xff]  ;;  %v35_v12 = vld [vmem:[%s1488_s0 + $0x88] sm:$0xff]  ;;  %v37_v15 = vld [vmem:[%s1488_s0 + $0x98] sm:$0xff] }
   0x5   :  { %1028 = vmatprep.mubr.msk.bf16.mxu0 %vm82_vm0, %v50_v4  ;;  %v58_v13 = vpack.c.bf16 %v35_v12, %v34_v11  ;;  %v38_v16 = vld [vmem:[%s1488_s0 + $0xa0] sm:$0xff]  ;;  %v59_v17 = vpack.c.bf16 %v37_v15, %v36_v14  ;;  %v39_v18 = vld [vmem:[%s1488_s0 + $0xa8] sm:$0xff]  ;;  %v24_v19 = vld [vmem:[%s1488_s0 + $0x30] sm:$0xff] }
   0x6   :  { %v25_v20 = vld [vmem:[%s1488_s0 + $0x38] sm:$0xff]  ;;  %v26_v21 = vld [vmem:[%s1488_s0 + $0x40] sm:$0xff]  ;;  %v60_v22 = vpack.c.bf16 %v39_v18, %v38_v16  ;;  %v27_v23 = vld [vmem:[%s1488_s0 + $0x48] sm:$0xff] }
   0x7   :  { %1027 = vmatpush3.bf16.msra.mxu0 %v1145_v1  ;;  %1143 = vmatpush3.bf16.msra.mxu1 %v1145_v1  ;;  %v40_v24 = vld [vmem:[%s1488_s0 + $0xb0] sm:$0xff]  ;;  %v41_v25 = vld [vmem:[%s1488_s0 + $0xb8] sm:$0xff]  ;;  %v42_v26 = vld [vmem:[%s1488_s0 + $0xc0] sm:$0xff]  ;;  %v53_v29 = vpack.c.bf16 %v25_v20, %v24_v19  ;;  %v54_v31 = vpack.c.bf16 %v27_v23, %v26_v21 }
   0x8   :  { %1044 = vmatprep.mubr.msk.bf16.mxu1 %vm82_vm0, %v58_v13  ;;  %v43_v27 = vld [vmem:[%s1488_s0 + $0xc8] sm:$0xff]  ;;  %v1146_v28 = vld [vmem:[%s1489_s2] sm:$0xff]   ;;  %v61_v32 = vpack.c.bf16 %v41_v25, %v40_v24  ;;  %v1148_v34 = vld [vmem:[%s1489_s2 + $0x10] sm:$0xff]  }
   0x9   :  { %v1147_v30 = vld [vmem:[%s1489_s2 + $0x8] sm:$0xff]   ;;  %1060 = vmatprep.subr.bf16.mxu1 %v1146_v28  ;;  %v62_v33 = vpack.c.bf16 %v43_v27, %v42_v26  ;;  %v28_v35 = vld [vmem:[%s1488_s0 + $0x50] sm:$0xff]  ;;  %v29_v36 = vld [vmem:[%s1488_s0 + $0x58] sm:$0xff] }
   0xa   :  { %1029 = vmatmul.mubr.msk.bf16.vlgmr.msra.gmra.mrb[0].mxu0 %vm82_vm0, %v51_v9  ;;  %1045 = vmatmul.mubr.msk.bf16.vlgmr.msra.gmra.mrb[0].mxu1 %vm82_vm0, %v59_v17  ;;  %v30_v37 = vld [vmem:[%s1488_s0 + $0x60] sm:$0xff]  ;;  %v31_v38 = vld [vmem:[%s1488_s0 + $0x68] sm:$0xff]  ;;  %v44_v39 = vld [vmem:[%s1488_s0 + $0xd0] sm:$0xff]  ;;  %v55_v43 = vpack.c.bf16 %v29_v36, %v28_v35 }
   0xb   :  { %1032 = vmatprep.mubr.msk.bf16.mxu0 %vm82_vm0, %v52_v10  ;;  %1048 = vmatprep.mubr.msk.bf16.mxu1 %vm82_vm0, %v60_v22  ;;  %v45_v40 = vld [vmem:[%s1488_s0 + $0xd8] sm:$0xff]  ;;  %v46_v41 = vld [vmem:[%s1488_s0 + $0xe0] sm:$0xff]  ;;  %v47_v42 = vld [vmem:[%s1488_s0 + $0xe8] sm:$0xff]  ;;  %v56_v44 = vpack.c.bf16 %v31_v38, %v30_v37 }
   0xc   :  { %1061 = vmatpush3.bf16.msra.mxu1 %v1146_v28  ;;  %v63_v45 = vpack.c.bf16 %v45_v40, %v44_v39  ;;  %v64_v46 = vpack.c.bf16 %v47_v42, %v46_v41  ;;  %v32_v47 = vld [vmem:[%s1488_s0 + $0x70] sm:$0xff]  ;;  %v33_v48 = vld [vmem:[%s1488_s0 + $0x78] sm:$0xff]  ;;  %v1150_v54 = vld [vmem:[%s1490_s3] sm:$0xff]  }
   0xd   :  { %1062 = vmatprep.subr.bf16.mxu1 %v1147_v30  ;;  %v48_v49 = vld [vmem:[%s1488_s0 + $0xf0] sm:$0xff]  ;;  %v49_v50 = vld [vmem:[%s1488_s0 + $0xf8] sm:$0xff]  ;;  %v57_v51 = vpack.c.bf16 %v33_v48, %v32_v47  ;;  %v1151_v55 = vld [vmem:[%s1490_s3 + $0x8] sm:$0xff]   ;;  %1100 = vmatprep.subr.bf16.mxu0 %v1150_v54 }
   0xe   :  { %v65_v52 = vpack.c.bf16 %v49_v50, %v48_v49  ;;  %v1149_v53 = vld [vmem:[%s1489_s2 + $0x18] sm:$0xff]   ;;  %1101 = vmatpush3.bf16.msra.mxu0 %v1150_v54  ;;  %v1152_v56 = vld [vmem:[%s1490_s3 + $0x10] sm:$0xff]  }
   0xf   :  { %1102 = vmatprep.subr.bf16.mxu0 %v1151_v55 }
  0x10   :  { %1063 = vmatpush3.bf16.msra.mxu1 %v1147_v30 }
  0x11   :  { %1064 = vmatprep.subr.bf16.mxu1 %v1148_v34 }
  0x12   :  { %1033 = vmatmul.mubr.msk.bf16.gmra.mrb[4].mxu0 %vm82_vm0, %v53_v29  ;;  %1049 = vmatmul.mubr.msk.bf16.gmra.mrb[4].mxu1 %vm82_vm0, %v61_v32 }
  0x13   :  { %1036 = vmatprep.mubr.msk.bf16.mxu0 %vm82_vm0, %v54_v31  ;;  %1052 = vmatprep.mubr.msk.bf16.mxu1 %vm82_vm0, %v62_v33 }
  0x14   :  { %1065 = vmatpush3.bf16.msra.mxu1 %v1148_v34  ;;  %1103 = vmatpush3.bf16.msra.mxu0 %v1151_v55 }
  0x15   :  { %1066 = vmatprep.subr.bf16.mxu1 %v1149_v53  ;;  %1104 = vmatprep.subr.bf16.mxu0 %v1152_v56 }
  0x18   :  { %1067 = vmatpush3.bf16.msra.mxu1 %v1149_v53  ;;  %1105 = vmatpush3.bf16.msra.mxu0 %v1152_v56 }
  0x1a   :  { %1037 = vmatmul.mubr.msk.bf16.gmra.mrb[8].mxu0 %vm82_vm0, %v55_v43  ;;  %1053 = vmatmul.mubr.msk.bf16.gmra.mrb[8].mxu1 %vm82_vm0, %v63_v45 }
  0x1b   :  { %1040 = vmatprep.mubr.msk.bf16.mxu0 %vm82_vm0, %v56_v44  ;;  %1056 = vmatprep.mubr.msk.bf16.mxu1 %vm82_vm0, %v64_v46 }
  0x22   :  { %1041 = vmatmul.mubr.msk.bf16.gmra.mrb[12].mxu0 %vm82_vm0, %v57_v51  ;;  %1057 = vmatmul.mubr.msk.bf16.gmra.mrb[12].mxu1 %vm82_vm0, %v65_v52 }
  0xdd   :  { %v1030_v57 = vpop.f32.mrb[0].mxu0  ;;  %v1046_v59 = vpop.f32.mrb[0].mxu1 }
  0xde   :  { %v165_v58 = vpop.f32.mrb[1].mxu0  ;;  %v310_v61 = vmax.f32 %v1046_v59, 0.0  ;;  %v229_v62 = vpop.f32.mrb[1].mxu1  ;;  %v294_v63 = vmax.f32 %v1030_v57, 0.0 }
  0xdf   :  { %v1031_v60 = vpop.f32.mrb[2].mxu0  ;;  %v308_v2 = vmax.f32 %v229_v62, 0.0  ;;  %v1047_v3 = vpop.f32.mrb[2].mxu1  ;;  %v292_v4 = vmax.f32 %v165_v58, 0.0 }
  0xe0   :  { %v295_v0 = vmax.f32 %v1031_v60, 0.0  ;;  %v168_v1 = vpop.f32.mrb[3].mxu0  ;;  %v311_v6 = vmax.f32 %v1047_v3, 0.0  ;;  %v232_v7 = vpop.f32.mrb[3].mxu1 }
  0xe1   :  { %v293_v5 = vmax.f32 %v168_v1, 0.0  ;;  %v309_v9 = vmax.f32 %v232_v7, 0.0 }
  0xe2   :  { %v325_v8 = vpack.c.bf16 %v295_v0, %v294_v63  ;;  %v1318_v11 = vpack.c.bf16 %v311_v6, %v310_v61 }
  0xe3   :  { %v324_v10 = vpack.c.bf16 %v293_v5, %v292_v4  ;;  %v1320_v12 = vpack.c.bf16 %v309_v9, %v308_v2  ;;  %v1153_v9 = vld [vmem:[%s1490_s3 + $0x18] sm:$0xff]  }
  0xe4   :  { %1106 = vmatprep.subr.bf16.mxu0 %v1153_v9 }
  0xe5   :  { %v1034_v13 = vpop.f32.mrb[4].mxu0  ;;  %1068 = vmatprep.mubr.msk.bf16.mxu1 %vm372_vm1, %v324_v10  ;;  %v1050_v15 = vpop.f32.mrb[4].mxu1  ;;  %1107 = vmatpush3.bf16.msra.mxu0 %v1153_v9 }
  0xe6   :  { %v181_v14 = vpop.f32.mrb[5].mxu0  ;;  %1069 = vmatmul.mubr.msk.bf16.vlgmr.msra.gmra.mrb[16].mxu1 %vm372_vm1, %v325_v8  ;;  %v314_v17 = vmax.f32 %v1050_v15, 0.0  ;;  %v245_v18 = vpop.f32.mrb[5].mxu1  ;;  %v298_v19 = vmax.f32 %v1034_v13, 0.0 }
  0xe7   :  { %v1035_v16 = vpop.f32.mrb[6].mxu0  ;;  %v312_v22 = vmax.f32 %v245_v18, 0.0  ;;  %v1051_v23 = vpop.f32.mrb[6].mxu1  ;;  %v296_v24 = vmax.f32 %v181_v14, 0.0 }
  0xe8   :  { %v299_v20 = vmax.f32 %v1035_v16, 0.0  ;;  %v184_v21 = vpop.f32.mrb[7].mxu0  ;;  %v315_v26 = vmax.f32 %v1051_v23, 0.0  ;;  %v248_v27 = vpop.f32.mrb[7].mxu1 }
  0xe9   :  { %v297_v25 = vmax.f32 %v184_v21, 0.0  ;;  %v313_v29 = vmax.f32 %v248_v27, 0.0 }
  0xea   :  { %v327_v28 = vpack.c.bf16 %v299_v20, %v298_v19  ;;  %v335_v31 = vpack.c.bf16 %v315_v26, %v314_v17 }
  0xeb   :  { %v326_v30 = vpack.c.bf16 %v297_v25, %v296_v24  ;;  %v334_v32 = vpack.c.bf16 %v313_v29, %v312_v22 }
  0xed   :  { %v1038_v33 = vpop.f32.mrb[8].mxu0  ;;  %1072 = vmatprep.mubr.msk.bf16.mxu1 %vm372_vm1, %v326_v30  ;;  %v1054_v35 = vpop.f32.mrb[8].mxu1 }
  0xee   :  { %v197_v34 = vpop.f32.mrb[9].mxu0  ;;  %1073 = vmatmul.mubr.msk.bf16.gmra.mrb[20].mxu1 %vm372_vm1, %v327_v28  ;;  %v318_v37 = vmax.f32 %v1054_v35, 0.0  ;;  %v261_v38 = vpop.f32.mrb[9].mxu1  ;;  %v302_v39 = vmax.f32 %v1038_v33, 0.0 }
  0xef   :  { %v1039_v36 = vpop.f32.mrb[10].mxu0  ;;  %v316_v42 = vmax.f32 %v261_v38, 0.0  ;;  %v1055_v43 = vpop.f32.mrb[10].mxu1  ;;  %v300_v44 = vmax.f32 %v197_v34, 0.0 }
  0xf0   :  { %v303_v40 = vmax.f32 %v1039_v36, 0.0  ;;  %v200_v41 = vpop.f32.mrb[11].mxu0  ;;  %v319_v46 = vmax.f32 %v1055_v43, 0.0  ;;  %v264_v47 = vpop.f32.mrb[11].mxu1 }
  0xf1   :  { %v301_v45 = vmax.f32 %v200_v41, 0.0  ;;  %v317_v49 = vmax.f32 %v264_v47, 0.0 }
  0xf2   :  { %v329_v48 = vpack.c.bf16 %v303_v40, %v302_v39  ;;  %v337_v51 = vpack.c.bf16 %v319_v46, %v318_v37 }
  0xf3   :  { %v328_v50 = vpack.c.bf16 %v301_v45, %v300_v44  ;;  %v336_v52 = vpack.c.bf16 %v317_v49, %v316_v42 }
  0xf5   :  { %v1042_v53 = vpop.f32.mrb[12].mxu0  ;;  %1076 = vmatprep.mubr.msk.bf16.mxu1 %vm372_vm1, %v328_v50  ;;  %v1058_v55 = vpop.f32.mrb[12].mxu1 }
  0xf6   :  { %v213_v54 = vpop.f32.mrb[13].mxu0  ;;  %1077 = vmatmul.mubr.msk.bf16.gmra.mrb[24].mxu1 %vm372_vm1, %v329_v48  ;;  %v322_v57 = vmax.f32 %v1058_v55, 0.0  ;;  %v277_v58 = vpop.f32.mrb[13].mxu1  ;;  %v306_v59 = vmax.f32 %v1042_v53, 0.0 }
  0xf7   :  { %v1043_v56 = vpop.f32.mrb[14].mxu0  ;;  %v320_v62 = vmax.f32 %v277_v58, 0.0  ;;  %v1059_v63 = vpop.f32.mrb[14].mxu1  ;;  %v304_v0 = vmax.f32 %v213_v54, 0.0 }
  0xf8   :  { %v307_v60 = vmax.f32 %v1043_v56, 0.0  ;;  %v216_v61 = vpop.f32.mrb[15].mxu0  ;;  %v323_v2 = vmax.f32 %v1059_v63, 0.0  ;;  %v280_v3 = vpop.f32.mrb[15].mxu1 }
  0xf9   :  { %v305_v1 = vmax.f32 %v216_v61, 0.0  ;;  %v321_v5 = vmax.f32 %v280_v3, 0.0 }
  0xfa   :  { %v331_v4 = vpack.c.bf16 %v307_v60, %v306_v59  ;;  %v339_v7 = vpack.c.bf16 %v323_v2, %v322_v57 }
  0xfb   :  { %v330_v6 = vpack.c.bf16 %v305_v1, %v304_v0  ;;  %v338_v8 = vpack.c.bf16 %v321_v5, %v320_v62 }
  0xfd   :  { %1080 = vmatprep.mubr.msk.bf16.mxu1 %vm372_vm1, %v330_v6 }
  0xfe   :  { %1081 = vmatmul.mubr.msk.bf16.gmra.mrb[28].mxu1 %vm372_vm1, %v331_v4 }
  0xff   :  { %1084 = vmatprep.mubr.msk.bf16.mxu1 %vm372_vm1, %v1320_v12 }
 0x106   :  { %1085 = vmatmul.mubr.msk.bf16.gmra.mrb[32].mxu1 %vm372_vm1, %v1318_v11 }
 0x107   :  { %1088 = vmatprep.mubr.msk.bf16.mxu1 %vm372_vm1, %v334_v32 }
 0x10e   :  { %1089 = vmatmul.mubr.msk.bf16.gmra.mrb[36].mxu1 %vm372_vm1, %v335_v31 }
 0x10f   :  { %1092 = vmatprep.mubr.msk.bf16.mxu1 %vm372_vm1, %v336_v52 }
 0x116   :  { %1093 = vmatmul.mubr.msk.bf16.gmra.mrb[40].mxu1 %vm372_vm1, %v337_v51 }
 0x117   :  { %1096 = vmatprep.mubr.msk.bf16.mxu1 %vm372_vm1, %v338_v8 }
 0x11e   :  { %1097 = vmatmul.mubr.msk.bf16.gmra.mrb[44].mxu1 %vm372_vm1, %v339_v7 }
 0x1b9   :  { %v1070_v10 = vpop.f32.mrb[16].mxu1 }
 0x1ba   :  { %v455_v11 = vpop.f32.mrb[17].mxu1  ;;  %v584_v13 = vmax.f32 %v1070_v10, 0.0 }
 0x1bb   :  { %v1071_v12 = vpop.f32.mrb[18].mxu1  ;;  %v582_v16 = vmax.f32 %v455_v11, 0.0 }
 0x1bc   :  { %v585_v14 = vmax.f32 %v1071_v12, 0.0  ;;  %v458_v15 = vpop.f32.mrb[19].mxu1 }
 0x1bd   :  { %v583_v17 = vmax.f32 %v458_v15, 0.0 }
 0x1be   :  { %v615_v18 = vpack.c.bf16 %v585_v14, %v584_v13 }
 0x1bf   :  { %v614_v19 = vpack.c.bf16 %v583_v17, %v582_v16 }
 0x1c1   :  { %v1074_v20 = vpop.f32.mrb[20].mxu1  ;;  %1108 = vmatprep.mubr.msk.bf16.mxu0 %vm372_vm1, %v614_v19 }
 0x1c2   :  { %v471_v21 = vpop.f32.mrb[21].mxu1  ;;  %1109 = vmatmul.mubr.msk.bf16.vlgmr.msra.gmra.mrb[16].mxu0 %vm372_vm1, %v615_v18  ;;  %v588_v23 = vmax.f32 %v1074_v20, 0.0 }
 0x1c3   :  { %v1075_v22 = vpop.f32.mrb[22].mxu1  ;;  %v586_v26 = vmax.f32 %v471_v21, 0.0 }
 0x1c4   :  { %v589_v24 = vmax.f32 %v1075_v22, 0.0  ;;  %v474_v25 = vpop.f32.mrb[23].mxu1 }
 0x1c5   :  { %v587_v27 = vmax.f32 %v474_v25, 0.0 }
 0x1c6   :  { %v617_v28 = vpack.c.bf16 %v589_v24, %v588_v23 }
 0x1c7   :  { %v616_v29 = vpack.c.bf16 %v587_v27, %v586_v26 }
 0x1c9   :  { %v1078_v30 = vpop.f32.mrb[24].mxu1  ;;  %1112 = vmatprep.mubr.msk.bf16.mxu0 %vm372_vm1, %v616_v29 }
 0x1ca   :  { %v487_v31 = vpop.f32.mrb[25].mxu1  ;;  %1113 = vmatmul.mubr.msk.bf16.gmra.mrb[20].mxu0 %vm372_vm1, %v617_v28  ;;  %v592_v33 = vmax.f32 %v1078_v30, 0.0 }
 0x1cb   :  { %v1079_v32 = vpop.f32.mrb[26].mxu1  ;;  %v590_v36 = vmax.f32 %v487_v31, 0.0 }
 0x1cc   :  { %v593_v34 = vmax.f32 %v1079_v32, 0.0  ;;  %v490_v35 = vpop.f32.mrb[27].mxu1 }
 0x1cd   :  { %v591_v37 = vmax.f32 %v490_v35, 0.0 }
 0x1ce   :  { %v619_v38 = vpack.c.bf16 %v593_v34, %v592_v33 }
 0x1cf   :  { %v618_v39 = vpack.c.bf16 %v591_v37, %v590_v36 }
 0x1d1   :  { %v1082_v40 = vpop.f32.mrb[28].mxu1  ;;  %1116 = vmatprep.mubr.msk.bf16.mxu0 %vm372_vm1, %v618_v39 }
 0x1d2   :  { %v503_v41 = vpop.f32.mrb[29].mxu1  ;;  %1117 = vmatmul.mubr.msk.bf16.gmra.mrb[24].mxu0 %vm372_vm1, %v619_v38  ;;  %v596_v43 = vmax.f32 %v1082_v40, 0.0 }
 0x1d3   :  { %v1083_v42 = vpop.f32.mrb[30].mxu1  ;;  %v594_v46 = vmax.f32 %v503_v41, 0.0 }
 0x1d4   :  { %v597_v44 = vmax.f32 %v1083_v42, 0.0  ;;  %v506_v45 = vpop.f32.mrb[31].mxu1 }
 0x1d5   :  { %v595_v47 = vmax.f32 %v506_v45, 0.0 }
 0x1d6   :  { %v621_v48 = vpack.c.bf16 %v597_v44, %v596_v43 }
 0x1d7   :  { %v620_v49 = vpack.c.bf16 %v595_v47, %v594_v46 }
 0x1d9   :  { %v1086_v50 = vpop.f32.mrb[32].mxu1  ;;  %1120 = vmatprep.mubr.msk.bf16.mxu0 %vm372_vm1, %v620_v49 }
 0x1da   :  { %v519_v51 = vpop.f32.mrb[33].mxu1  ;;  %1121 = vmatmul.mubr.msk.bf16.gmra.mrb[28].mxu0 %vm372_vm1, %v621_v48  ;;  %v600_v53 = vmax.f32 %v1086_v50, 0.0 }
 0x1db   :  { %v1087_v52 = vpop.f32.mrb[34].mxu1  ;;  %v598_v56 = vmax.f32 %v519_v51, 0.0 }
 0x1dc   :  { %v601_v54 = vmax.f32 %v1087_v52, 0.0  ;;  %v522_v55 = vpop.f32.mrb[35].mxu1 }
 0x1dd   :  { %v599_v57 = vmax.f32 %v522_v55, 0.0 }
 0x1de   :  { %v623_v58 = vpack.c.bf16 %v601_v54, %v600_v53 }
 0x1df   :  { %v622_v59 = vpack.c.bf16 %v599_v57, %v598_v56 }
 0x1e1   :  { %v1090_v60 = vpop.f32.mrb[36].mxu1  ;;  %1124 = vmatprep.mubr.msk.bf16.mxu0 %vm372_vm1, %v622_v59 }
 0x1e2   :  { %v535_v61 = vpop.f32.mrb[37].mxu1  ;;  %1125 = vmatmul.mubr.msk.bf16.gmra.mrb[32].mxu0 %vm372_vm1, %v623_v58  ;;  %v604_v63 = vmax.f32 %v1090_v60, 0.0 }
 0x1e3   :  { %v1091_v62 = vpop.f32.mrb[38].mxu1  ;;  %v602_v2 = vmax.f32 %v535_v61, 0.0 }
 0x1e4   :  { %v605_v0 = vmax.f32 %v1091_v62, 0.0  ;;  %v538_v1 = vpop.f32.mrb[39].mxu1 }
 0x1e5   :  { %v603_v3 = vmax.f32 %v538_v1, 0.0 }
 0x1e6   :  { %v625_v4 = vpack.c.bf16 %v605_v0, %v604_v63 }
 0x1e7   :  { %v624_v5 = vpack.c.bf16 %v603_v3, %v602_v2 }
 0x1e9   :  { %v1094_v6 = vpop.f32.mrb[40].mxu1  ;;  %1128 = vmatprep.mubr.msk.bf16.mxu0 %vm372_vm1, %v624_v5 }
 0x1ea   :  { %v551_v7 = vpop.f32.mrb[41].mxu1  ;;  %1129 = vmatmul.mubr.msk.bf16.gmra.mrb[36].mxu0 %vm372_vm1, %v625_v4  ;;  %v608_v9 = vmax.f32 %v1094_v6, 0.0 }
 0x1eb   :  { %v1095_v8 = vpop.f32.mrb[42].mxu1  ;;  %v606_v12 = vmax.f32 %v551_v7, 0.0 }
 0x1ec   :  { %v609_v10 = vmax.f32 %v1095_v8, 0.0  ;;  %v554_v11 = vpop.f32.mrb[43].mxu1 }
 0x1ed   :  { %v607_v13 = vmax.f32 %v554_v11, 0.0 }
 0x1ee   :  { %v627_v14 = vpack.c.bf16 %v609_v10, %v608_v9 }
 0x1ef   :  { %v626_v15 = vpack.c.bf16 %v607_v13, %v606_v12 }
 0x1f1   :  { %v1098_v16 = vpop.f32.mrb[44].mxu1  ;;  %1132 = vmatprep.mubr.msk.bf16.mxu0 %vm372_vm1, %v626_v15 }
 0x1f2   :  { %v567_v17 = vpop.f32.mrb[45].mxu1  ;;  %1133 = vmatmul.mubr.msk.bf16.gmra.mrb[40].mxu0 %vm372_vm1, %v627_v14  ;;  %v612_v19 = vmax.f32 %v1098_v16, 0.0 }
 0x1f3   :  { %v1099_v18 = vpop.f32.mrb[46].mxu1  ;;  %v610_v22 = vmax.f32 %v567_v17, 0.0 }
 0x1f4   :  { %v613_v20 = vmax.f32 %v1099_v18, 0.0  ;;  %v570_v21 = vpop.f32.mrb[47].mxu1 }
 0x1f5   :  { %v611_v23 = vmax.f32 %v570_v21, 0.0 }
 0x1f6   :  { %v629_v24 = vpack.c.bf16 %v613_v20, %v612_v19 }
 0x1f7   :  { %v628_v25 = vpack.c.bf16 %v611_v23, %v610_v22 }
 0x1f9   :  { %1136 = vmatprep.mubr.msk.bf16.mxu0 %vm372_vm1, %v628_v25 }
 0x1fa   :  { %1137 = vmatmul.mubr.msk.bf16.gmra.mrb[44].mxu0 %vm372_vm1, %v629_v24 }
 0x295   :  { %v1110_v26 = vpop.f32.mrb[16].mxu0 }
 0x296   :  { %874 = vst.msk [vmem:[%s1491_s4 + $0x10] sm:$0xff] %vm871_vm2, %v1110_v26  ;;  %v744_v27 = vpop.f32.mrb[17].mxu0 }
 0x297   :  { %872 = vst.msk [vmem:[%s1491_s4] sm:$0xff] %vm871_vm2, %v744_v27  ;;  %v1111_v28 = vpop.f32.mrb[18].mxu0 }
 0x298   :  { %875 = vst.msk [vmem:[%s1491_s4 + $0x18] sm:$0xff] %vm871_vm2, %v1111_v28  ;;  %v747_v29 = vpop.f32.mrb[19].mxu0 }
 0x299   :  { %873 = vst.msk [vmem:[%s1491_s4 + $0x8] sm:$0xff] %vm871_vm2, %v747_v29 }
 0x29d   :  { %v1114_v30 = vpop.f32.mrb[20].mxu0 }
 0x29e   :  { %878 = vst.msk [vmem:[%s1491_s4 + $0x30] sm:$0xff] %vm871_vm2, %v1114_v30  ;;  %v760_v31 = vpop.f32.mrb[21].mxu0 }
 0x29f   :  { %876 = vst.msk [vmem:[%s1491_s4 + $0x20] sm:$0xff] %vm871_vm2, %v760_v31  ;;  %v1115_v32 = vpop.f32.mrb[22].mxu0 }
 0x2a0   :  { %879 = vst.msk [vmem:[%s1491_s4 + $0x38] sm:$0xff] %vm871_vm2, %v1115_v32  ;;  %v763_v33 = vpop.f32.mrb[23].mxu0 }
 0x2a1   :  { %877 = vst.msk [vmem:[%s1491_s4 + $0x28] sm:$0xff] %vm871_vm2, %v763_v33 }
 0x2a5   :  { %v1118_v34 = vpop.f32.mrb[24].mxu0 }
 0x2a6   :  { %882 = vst.msk [vmem:[%s1491_s4 + $0x50] sm:$0xff] %vm871_vm2, %v1118_v34  ;;  %v776_v35 = vpop.f32.mrb[25].mxu0 }
 0x2a7   :  { %880 = vst.msk [vmem:[%s1491_s4 + $0x40] sm:$0xff] %vm871_vm2, %v776_v35  ;;  %v1119_v36 = vpop.f32.mrb[26].mxu0 }
 0x2a8   :  { %883 = vst.msk [vmem:[%s1491_s4 + $0x58] sm:$0xff] %vm871_vm2, %v1119_v36  ;;  %v779_v37 = vpop.f32.mrb[27].mxu0 }
 0x2a9   :  { %881 = vst.msk [vmem:[%s1491_s4 + $0x48] sm:$0xff] %vm871_vm2, %v779_v37 }
 0x2ad   :  { %v1122_v38 = vpop.f32.mrb[28].mxu0 }
 0x2ae   :  { %886 = vst.msk [vmem:[%s1491_s4 + $0x70] sm:$0xff] %vm871_vm2, %v1122_v38  ;;  %v792_v39 = vpop.f32.mrb[29].mxu0 }
 0x2af   :  { %884 = vst.msk [vmem:[%s1491_s4 + $0x60] sm:$0xff] %vm871_vm2, %v792_v39  ;;  %v1123_v40 = vpop.f32.mrb[30].mxu0 }
 0x2b0   :  { %887 = vst.msk [vmem:[%s1491_s4 + $0x78] sm:$0xff] %vm871_vm2, %v1123_v40  ;;  %v795_v41 = vpop.f32.mrb[31].mxu0 }
 0x2b1   :  { %885 = vst.msk [vmem:[%s1491_s4 + $0x68] sm:$0xff] %vm871_vm2, %v795_v41 }
 0x2b5   :  { %v1126_v42 = vpop.f32.mrb[32].mxu0 }
 0x2b6   :  { %890 = vst.msk [vmem:[%s1491_s4 + $0x90] sm:$0xff] %vm871_vm2, %v1126_v42  ;;  %v808_v43 = vpop.f32.mrb[33].mxu0 }
 0x2b7   :  { %888 = vst.msk [vmem:[%s1491_s4 + $0x80] sm:$0xff] %vm871_vm2, %v808_v43  ;;  %v1127_v44 = vpop.f32.mrb[34].mxu0 }
 0x2b8   :  { %891 = vst.msk [vmem:[%s1491_s4 + $0x98] sm:$0xff] %vm871_vm2, %v1127_v44  ;;  %v811_v45 = vpop.f32.mrb[35].mxu0 }
 0x2b9   :  { %889 = vst.msk [vmem:[%s1491_s4 + $0x88] sm:$0xff] %vm871_vm2, %v811_v45 }
 0x2bd   :  { %v1130_v46 = vpop.f32.mrb[36].mxu0 }
 0x2be   :  { %894 = vst.msk [vmem:[%s1491_s4 + $0xb0] sm:$0xff] %vm871_vm2, %v1130_v46  ;;  %v824_v47 = vpop.f32.mrb[37].mxu0 }
 0x2bf   :  { %892 = vst.msk [vmem:[%s1491_s4 + $0xa0] sm:$0xff] %vm871_vm2, %v824_v47  ;;  %v1131_v48 = vpop.f32.mrb[38].mxu0 }
 0x2c0   :  { %895 = vst.msk [vmem:[%s1491_s4 + $0xb8] sm:$0xff] %vm871_vm2, %v1131_v48  ;;  %v827_v49 = vpop.f32.mrb[39].mxu0 }
 0x2c1   :  { %893 = vst.msk [vmem:[%s1491_s4 + $0xa8] sm:$0xff] %vm871_vm2, %v827_v49 }
 0x2c5   :  { %v1134_v50 = vpop.f32.mrb[40].mxu0 }
 0x2c6   :  { %898 = vst.msk [vmem:[%s1491_s4 + $0xd0] sm:$0xff] %vm871_vm2, %v1134_v50  ;;  %v840_v51 = vpop.f32.mrb[41].mxu0 }
 0x2c7   :  { %896 = vst.msk [vmem:[%s1491_s4 + $0xc0] sm:$0xff] %vm871_vm2, %v840_v51  ;;  %v1135_v52 = vpop.f32.mrb[42].mxu0 }
 0x2c8   :  { %899 = vst.msk [vmem:[%s1491_s4 + $0xd8] sm:$0xff] %vm871_vm2, %v1135_v52  ;;  %v843_v53 = vpop.f32.mrb[43].mxu0 }
 0x2c9   :  { %897 = vst.msk [vmem:[%s1491_s4 + $0xc8] sm:$0xff] %vm871_vm2, %v843_v53 }
 0x2cd   :  { %v1138_v54 = vpop.f32.mrb[44].mxu0 }
 0x2ce   :  { %902 = vst.msk [vmem:[%s1491_s4 + $0xf0] sm:$0xff] %vm871_vm2, %v1138_v54  ;;  %v856_v55 = vpop.f32.mrb[45].mxu0 }
 0x2cf   :  { %900 = vst.msk [vmem:[%s1491_s4 + $0xe0] sm:$0xff] %vm871_vm2, %v856_v55  ;;  %v1139_v56 = vpop.f32.mrb[46].mxu0 }
 0x2d0   :  { %903 = vst.msk [vmem:[%s1491_s4 + $0xf8] sm:$0xff] %vm871_vm2, %v1139_v56  ;;  %v859_v57 = vpop.f32.mrb[47].mxu0 }
 0x2d1   :  { %901 = vst.msk [vmem:[%s1491_s4 + $0xe8] sm:$0xff] %vm871_vm2, %v859_v57 }

</bundles_post_ra>
